<compile_context>
chip_gen: v7x
topology: tpu7x:2x2x1
jax: 0.10.0
libtpu: 0.0.40
codegen_flags: <defaults>
</compile_context>

<pallas_src>
import functools

import jax
import jax.numpy as jnp
from jax.experimental import pallas as pl
from jax.experimental.pallas import tpu as pltpu


def _round_up(x, m):
    return ((x + m - 1) // m) * m


# ----------------------------------------------------------------------------
# Fused kernel: conv (im2col + one MXU matmul) + BN stats + BN apply + ReLU
# ----------------------------------------------------------------------------
def _fused_conv_bn_relu_kernel(x_ref, w_ref, gamma_ref, beta_ref, o_ref,
                               xflat_ref, col_ref, *,
                               N, C, H, W, KH, KW, pad, img_off, eps,
                               mxu_dtype):
    # x_ref:     (N*C, H*W)   NCHW input, spatial flattened (contiguous reshape)
    # w_ref:     (F, K)       K = KH*KW*C, tap-major / channel-minor order
    # gamma_ref: (F, 1)       BN weight
    # beta_ref:  (F, 1)       BN bias
    # o_ref:     (N, F, H*W)  NCHW-native output, spatial flattened
    # xflat_ref: (N*C, L)     flat, H-padded channel planes (f32 scratch)
    # col_ref:   (K, N*H*W)   lane-dense im2col matrix (f32 scratch)
    HW = H * W
    NC = N * C
    L = xflat_ref.shape[1]

    # --- Stage 1: stage each (n, c) plane as one flat, H-padded lane row. ---
    # Interior at a 128-aligned lane offset; only the two aligned halo/slack
    # lane blocks are zeroed (no full-buffer zero, no unaligned interior write).
    zdt = xflat_ref.dtype
    if img_off > 0:
        xflat_ref[:, 0:img_off] = jnp.zeros((NC, img_off), zdt)
    if L - img_off - HW > 0:
        xflat_ref[:, img_off + HW:L] = jnp.zeros((NC, L - img_off - HW), zdt)
    xflat_ref[:, img_off:img_off + HW] = x_ref[...].astype(zdt)

    # --- Stage 2: im2col into the lane-dense (K, N*HW) matrix. ---
    # For stride 1, tap (kh, kw) of output position p = oh*W + ow reads the
    # flat plane at a constant lane shift; only the W boundary needs masking.
    lane = jax.lax.broadcasted_iota(jnp.int32, (1, HW), 1)
    ow_idx = (lane & (W - 1)) if (W & (W - 1)) == 0 else (lane % W)
    masks = []
    for kw in range(KW):
        lo, hi = pad - kw, W + pad - kw              # valid iff lo <= ow < hi
        masks.append(None if (lo <= 0 and hi >= W)
                     else (ow_idx >= lo) & (ow_idx < hi))

    for n in range(N):
        rows = slice(n * C, (n + 1) * C)
        cols = slice(n * HW, (n + 1) * HW)
        for kh in range(KH):
            for kw in range(KW):
                t = kh * KW + kw
                start = img_off - pad * W + kh * W + kw - pad
                win = xflat_ref[rows, start:start + HW]          # (C, HW)
                if masks[kw] is not None:
                    win = jnp.where(masks[kw], win, 0.0)
                col_ref[t * C:(t + 1) * C, cols] = win

    # --- Stage 3: single MXU contraction over K = KH*KW*C, all images. ---
    acc = jnp.dot(w_ref[...], col_ref[...].astype(mxu_dtype),
                  preferred_element_type=jnp.float32)            # (F, N*HW)

    # --- Stage 4: train-mode BatchNorm (exact two-pass, biased var) + ReLU. ---
    inv_m = 1.0 / (N * HW)
    mean = jnp.sum(acc, axis=1, keepdims=True) * inv_m           # (F, 1)
    cen = acc - mean
    var = jnp.sum(cen * cen, axis=1, keepdims=True) * inv_m      # (F, 1)
    scale = gamma_ref[...] * jax.lax.rsqrt(var + eps)            # (F, 1)
    y = jnp.maximum(cen * scale + beta_ref[...], 0.0)            # (F, N*HW)

    # --- Stage 5: lane-dense, NCHW-native stores (one slab per image). ---
    for n in range(N):
        o_ref[n] = y[:, n * HW:(n + 1) * HW].astype(o_ref.dtype)


# ----------------------------------------------------------------------------
# Wrapper
# ----------------------------------------------------------------------------
def convolutional_forward(x_nchw, conv_w, conv_b, gamma, beta, *, stride,
                          eps=1e-5, compute_dtype=jnp.float32,
                          out_dtype=jnp.float32):
    # The conv bias is a per-channel constant -> exactly cancelled by the
    # train-mode BN batch-mean subtraction (NOT valid for eval-mode BN).
    del conv_b

    N, C, H, W = x_nchw.shape
    F, C_w, KH, KW = conv_w.shape
    assert C_w == C
    assert KH == KW and KH % 2 == 1, "square odd kernel (padding = size // 2)"
    # TODO(synk): stride > 1 needs a strided tap gather (or wrapper space-to-depth).
    assert stride == 1, "only stride == 1 is implemented"
    pad = KH // 2
    OH, OW = H, W                               # "same" convolution
    HW = H * W
    K = KH * KW * C

    # Flat-plane scratch geometry: image interior at a 128-aligned lane offset
    # with >= pad*W + pad zero lanes in front (top halo + negative-shift slack).
    img_off = _round_up(pad * W + pad, 128)
    max_read = img_off - pad * W + (KH - 1) * W + (KW - 1) - pad + HW - 1
    L = _round_up(max_read + 1, 128)

    # Contiguous, metadata-only reshapes (no HBM transpose of the input).
    x2 = x_nchw.reshape(N * C, HW).astype(jnp.float32)
    w2 = jnp.transpose(conv_w, (0, 2, 3, 1)).reshape(F, K).astype(compute_dtype)
    g2 = gamma.reshape(F, 1).astype(jnp.float32)
    b2 = beta.reshape(F, 1).astype(jnp.float32)

    out_itemsize = jnp.dtype(out_dtype).itemsize
    # Everything (input, weights, im2col, activations) must fit in VMEM for the
    # single-step fused kernel.
    # TODO(synk): add an OH-strip-tiled two-pass fallback (per-strip conv+stats,
    # then BN apply) for activation sizes that do not fit VMEM (v7x: 64 MiB).
    vmem_bytes = (x2.size * 4 + _round_up(K, 8) * N * HW * 4 + N * C * L * 4
                  + N * F * HW * (4 + out_itemsize)
                  + w2.size * w2.dtype.itemsize)
    assert vmem_bytes < 24 * 1024 * 1024, (
        "shape too large for the single-step fused kernel", vmem_bytes)

    cost = pl.CostEstimate(
        flops=2 * F * K * N * HW + 6 * F * N * HW,
        transcendentals=F,
        bytes_accessed=(x2.size * 4 + w2.size * w2.dtype.itemsize + 4 * F * 4
                        + N * F * HW * out_itemsize))

    kernel = functools.partial(
        _fused_conv_bn_relu_kernel, N=N, C=C, H=H, W=W, KH=KH, KW=KW, pad=pad,
        img_off=img_off, eps=float(eps), mxu_dtype=compute_dtype)

    # Single grid step: the whole op is fused end-to-end in VMEM, so it is
    # launch/HBM-bound at these shapes; more grid steps would only add overhead.
    out = pl.pallas_call(
        kernel,
        out_shape=jax.ShapeDtypeStruct((N, F, HW), out_dtype),
        grid_spec=pltpu.PrefetchScalarGridSpec(
            num_scalar_prefetch=0,
            grid=(1,),
            in_specs=[
                pl.BlockSpec((N * C, HW), lambda i: (0, 0)),
                pl.BlockSpec((F, K), lambda i: (0, 0)),
                pl.BlockSpec((F, 1), lambda i: (0, 0)),
                pl.BlockSpec((F, 1), lambda i: (0, 0)),
            ],
            out_specs=pl.BlockSpec((N, F, HW), lambda i: (0, 0, 0)),
            scratch_shapes=[
                pltpu.VMEM((N * C, L), jnp.float32),     # flat H-padded planes
                pltpu.VMEM((K, N * HW), jnp.float32),    # lane-dense im2col
            ],
        ),
        compiler_params=pltpu.CompilerParams(
            dimension_semantics=("arbitrary",),
            vmem_limit_bytes=32 * 1024 * 1024),
        cost_estimate=cost,
    )(x2, w2, g2, b2)

    # (N, F, OH*OW) -> (N, F, OH, OW): contiguous, NCHW-native, no transpose.
    return out.reshape(N, F, OH, OW)


# ----------------------------------------------------------------------------
# Pure-JAX reference (includes the conv bias, which train-mode BN cancels).
# ----------------------------------------------------------------------------
def _reference(x_nchw, w_oihw, conv_bias, gamma, beta, *, stride, eps=1e-5):
    pad = w_oihw.shape[-1] // 2
    y = jax.lax.conv_general_dilated(
        x_nchw, w_oihw, window_strides=(stride, stride),
        padding=((pad, pad), (pad, pad)),
        dimension_numbers=("NCHW", "OIHW", "NCHW"))
    y = y + conv_bias[None, :, None, None]
    mean = jnp.mean(y, axis=(0, 2, 3), keepdims=True)
    var = jnp.mean(jnp.square(y - mean), axis=(0, 2, 3), keepdims=True)
    y = (y - mean) * jax.lax.rsqrt(var + eps)
    y = y * gamma[None, :, None, None] + beta[None, :, None, None]
    return jnp.maximum(y, 0.0)


if __name__ == "__main__":
    # Convolutional(img_channel=4, filters=8, size=3, stride=1)
    N, C, H, W = 2, 4, 16, 16
    FILTERS, SIZE, STRIDE = 8, 3, 1

    key = jax.random.PRNGKey(0)
    k_x, k_w, k_b, k_g, k_be = jax.random.split(key, 5)
    x = jax.random.normal(k_x, (N, C, H, W), jnp.float32)
    conv_w = 0.1 * jax.random.normal(k_w, (FILTERS, C, SIZE, SIZE), jnp.float32)
    conv_b = 0.05 * jax.random.normal(k_b, (FILTERS,), jnp.float32)
    gamma = 1.0 + 0.1 * jax.random.normal(k_g, (FILTERS,), jnp.float32)
    beta = 0.1 * jax.random.normal(k_be, (FILTERS,), jnp.float32)

    ref = _reference(x, conv_w, conv_b, gamma, beta, stride=STRIDE)

    # float32 MXU operands, float32 output (tight check).
    out = convolutional_forward(x, conv_w, conv_b, gamma, beta, stride=STRIDE)
    out = jax.block_until_ready(out)
    assert out.shape == (N, FILTERS, H, W), out.shape
    assert jnp.allclose(out, ref, atol=1e-3, rtol=1e-3), \
        float(jnp.max(jnp.abs(out - ref)))

    # bf16 MXU operands + bf16 activation output (loose check).
    out_bf16 = convolutional_forward(
        x, conv_w, conv_b, gamma, beta, stride=STRIDE,
        compute_dtype=jnp.bfloat16, out_dtype=jnp.bfloat16)
    out_bf16 = jax.block_until_ready(out_bf16)
    assert out_bf16.dtype == jnp.bfloat16
    assert jnp.allclose(out_bf16.astype(jnp.float32), ref, atol=5e-2, rtol=5e-2), \
        float(jnp.max(jnp.abs(out_bf16.astype(jnp.float32) - ref)))

    print("KERNEL_OK")
</pallas_src>

<mosaic_0001>
module attributes {stable_mosaic.version = 11 : i64} {
  func.func @_fused_conv_bn_relu_kernel(%arg0: i32, %arg1: memref<8x256xf32, #tpu.memory_space<vmem>>, %arg2: memref<8x36xf32, #tpu.memory_space<vmem>>, %arg3: memref<8x1xf32, #tpu.memory_space<vmem>>, %arg4: memref<8x1xf32, #tpu.memory_space<vmem>>, %arg5: memref<2x8x256xf32, #tpu.memory_space<vmem>>, %arg6: memref<8x512xf32, #tpu.memory_space<vmem>>, %arg7: memref<36x512xf32, #tpu.memory_space<vmem>>) attributes {dimension_semantics = [#tpu.dimension_semantics<arbitrary>], iteration_bounds = array<i64: 1>, scalar_prefetch = 0 : i64, scratch_operands = 2 : i64, tpu.core_type = #tpu.core_type<tc>, window_params = [{pipeline_mode = #tpu.pipeline_mode<synchronous>, transform_indices = @transform_0, window_bounds = array<i64: 8, 256>}, {pipeline_mode = #tpu.pipeline_mode<synchronous>, transform_indices = @transform_1, window_bounds = array<i64: 8, 36>}, {pipeline_mode = #tpu.pipeline_mode<synchronous>, transform_indices = @transform_2, window_bounds = array<i64: 8, 1>}, {pipeline_mode = #tpu.pipeline_mode<synchronous>, transform_indices = @transform_3, window_bounds = array<i64: 8, 1>}, {pipeline_mode = #tpu.pipeline_mode<synchronous>, transform_indices = @transform_4, window_bounds = array<i64: 2, 8, 256>}]} {
    %cst = arith.constant 0.000000e+00 : f32
    %0 = vector.broadcast %cst : f32 to vector<8x128xf32>
    %c0 = arith.constant 0 : index
    %c0_0 = arith.constant 0 : index
    %1 = vector.load %arg6[%c0, %c0_0] : memref<8x512xf32, #tpu.memory_space<vmem>>, vector<8x128xf32>
    tpu.vector_store %arg6[%c0, %c0_0], %0 {strides = array<i32>} : memref<8x512xf32, #tpu.memory_space<vmem>>, vector<8x128xf32>,
    %cst_1 = arith.constant 0.000000e+00 : f32
    %2 = vector.broadcast %cst_1 : f32 to vector<8x128xf32>
    %c0_2 = arith.constant 0 : index
    %c384 = arith.constant 384 : index
    %3 = vector.load %arg6[%c0_2, %c384] : memref<8x512xf32, #tpu.memory_space<vmem>>, vector<8x128xf32>
    tpu.vector_store %arg6[%c0_2, %c384], %2 {strides = array<i32>} : memref<8x512xf32, #tpu.memory_space<vmem>>, vector<8x128xf32>,
    %c0_3 = arith.constant 0 : index
    %c0_4 = arith.constant 0 : index
    %4 = vector.load %arg1[%c0_3, %c0_4] : memref<8x256xf32, #tpu.memory_space<vmem>>, vector<8x256xf32>
    %c0_5 = arith.constant 0 : index
    %c128 = arith.constant 128 : index
    %5 = vector.load %arg6[%c0_5, %c128] : memref<8x512xf32, #tpu.memory_space<vmem>>, vector<8x256xf32>
    tpu.vector_store %arg6[%c0_5, %c128], %4 {strides = array<i32>} : memref<8x512xf32, #tpu.memory_space<vmem>>, vector<8x256xf32>,
    %6 = tpu.iota {dimensions = array<i32: 1>} : vector<1x256xi32>
    %c15_i32 = arith.constant 15 : i32
    %7 = vector.broadcast %c15_i32 : i32 to vector<1x256xi32>
    %8 = arith.andi %6, %7 : vector<1x256xi32>
    %c1_i32 = arith.constant 1 : i32
    %9 = vector.broadcast %c1_i32 : i32 to vector<1x256xi32>
    %10 = arith.cmpi sge, %8, %9 : vector<1x256xi32>
    %c17_i32 = arith.constant 17 : i32
    %11 = vector.broadcast %c17_i32 : i32 to vector<1x256xi32>
    %12 = arith.cmpi slt, %8, %11 : vector<1x256xi32>
    %13 = arith.andi %10, %12 : vector<1x256xi1>
    %c-1_i32 = arith.constant -1 : i32
    %14 = vector.broadcast %c-1_i32 : i32 to vector<1x256xi32>
    %15 = arith.cmpi sge, %8, %14 : vector<1x256xi32>
    %c15_i32_6 = arith.constant 15 : i32
    %16 = vector.broadcast %c15_i32_6 : i32 to vector<1x256xi32>
    %17 = arith.cmpi slt, %8, %16 : vector<1x256xi32>
    %18 = arith.andi %15, %17 : vector<1x256xi1>
    %c0_7 = arith.constant 0 : index
    %c111 = arith.constant 111 : index
    %19 = vector.load %arg6[%c0_7, %c111] : memref<8x512xf32, #tpu.memory_space<vmem>>, vector<4x256xf32>
    %cst_8 = arith.constant 0.000000e+00 : f32
    %20 = vector.shape_cast %13 : vector<1x256xi1> to vector<1x256xi1>
    %21 = vector.broadcast %20 : vector<1x256xi1> to vector<4x256xi1>
    %22 = vector.broadcast %cst_8 : f32 to vector<4x256xf32>
    %23 = arith.select %21, %19, %22 : vector<4x256xi1>, vector<4x256xf32>
    %c0_9 = arith.constant 0 : index
    %c0_10 = arith.constant 0 : index
    %24 = vector.load %arg7[%c0_9, %c0_10] : memref<36x512xf32, #tpu.memory_space<vmem>>, vector<4x256xf32>
    tpu.vector_store %arg7[%c0_9, %c0_10], %23 {strides = array<i32>} : memref<36x512xf32, #tpu.memory_space<vmem>>, vector<4x256xf32>,
    %c0_11 = arith.constant 0 : index
    %c112 = arith.constant 112 : index
    %25 = vector.load %arg6[%c0_11, %c112] : memref<8x512xf32, #tpu.memory_space<vmem>>, vector<4x256xf32>
    %c4 = arith.constant 4 : index
    %c0_12 = arith.constant 0 : index
    %26 = vector.load %arg7[%c4, %c0_12] : memref<36x512xf32, #tpu.memory_space<vmem>>, vector<4x256xf32>
    tpu.vector_store %arg7[%c4, %c0_12], %25 {strides = array<i32>} : memref<36x512xf32, #tpu.memory_space<vmem>>, vector<4x256xf32>,
    %c0_13 = arith.constant 0 : index
    %c113 = arith.constant 113 : index
    %27 = vector.load %arg6[%c0_13, %c113] : memref<8x512xf32, #tpu.memory_space<vmem>>, vector<4x256xf32>
    %cst_14 = arith.constant 0.000000e+00 : f32
    %28 = vector.shape_cast %18 : vector<1x256xi1> to vector<1x256xi1>
    %29 = vector.broadcast %28 : vector<1x256xi1> to vector<4x256xi1>
    %30 = vector.broadcast %cst_14 : f32 to vector<4x256xf32>
    %31 = arith.select %29, %27, %30 : vector<4x256xi1>, vector<4x256xf32>
    %c8 = arith.constant 8 : index
    %c0_15 = arith.constant 0 : index
    %32 = vector.load %arg7[%c8, %c0_15] : memref<36x512xf32, #tpu.memory_space<vmem>>, vector<4x256xf32>
    tpu.vector_store %arg7[%c8, %c0_15], %31 {strides = array<i32>} : memref<36x512xf32, #tpu.memory_space<vmem>>, vector<4x256xf32>,
    %c0_16 = arith.constant 0 : index
    %c127 = arith.constant 127 : index
    %33 = vector.load %arg6[%c0_16, %c127] : memref<8x512xf32, #tpu.memory_space<vmem>>, vector<4x256xf32>
    %cst_17 = arith.constant 0.000000e+00 : f32
    %34 = vector.shape_cast %13 : vector<1x256xi1> to vector<1x256xi1>
    %35 = vector.broadcast %34 : vector<1x256xi1> to vector<4x256xi1>
    %36 = vector.broadcast %cst_17 : f32 to vector<4x256xf32>
    %37 = arith.select %35, %33, %36 : vector<4x256xi1>, vector<4x256xf32>
    %c12 = arith.constant 12 : index
    %c0_18 = arith.constant 0 : index
    %38 = vector.load %arg7[%c12, %c0_18] : memref<36x512xf32, #tpu.memory_space<vmem>>, vector<4x256xf32>
    tpu.vector_store %arg7[%c12, %c0_18], %37 {strides = array<i32>} : memref<36x512xf32, #tpu.memory_space<vmem>>, vector<4x256xf32>,
    %c0_19 = arith.constant 0 : index
    %c128_20 = arith.constant 128 : index
    %39 = vector.load %arg6[%c0_19, %c128_20] : memref<8x512xf32, #tpu.memory_space<vmem>>, vector<4x256xf32>
    %c16 = arith.constant 16 : index
    %c0_21 = arith.constant 0 : index
    %40 = vector.load %arg7[%c16, %c0_21] : memref<36x512xf32, #tpu.memory_space<vmem>>, vector<4x256xf32>
    tpu.vector_store %arg7[%c16, %c0_21], %39 {strides = array<i32>} : memref<36x512xf32, #tpu.memory_space<vmem>>, vector<4x256xf32>,
    %c0_22 = arith.constant 0 : index
    %c129 = arith.constant 129 : index
    %41 = vector.load %arg6[%c0_22, %c129] : memref<8x512xf32, #tpu.memory_space<vmem>>, vector<4x256xf32>
    %cst_23 = arith.constant 0.000000e+00 : f32
    %42 = vector.shape_cast %18 : vector<1x256xi1> to vector<1x256xi1>
    %43 = vector.broadcast %42 : vector<1x256xi1> to vector<4x256xi1>
    %44 = vector.broadcast %cst_23 : f32 to vector<4x256xf32>
    %45 = arith.select %43, %41, %44 : vector<4x256xi1>, vector<4x256xf32>
    %c20 = arith.constant 20 : index
    %c0_24 = arith.constant 0 : index
    %46 = vector.load %arg7[%c20, %c0_24] : memref<36x512xf32, #tpu.memory_space<vmem>>, vector<4x256xf32>
    tpu.vector_store %arg7[%c20, %c0_24], %45 {strides = array<i32>} : memref<36x512xf32, #tpu.memory_space<vmem>>, vector<4x256xf32>,
    %c0_25 = arith.constant 0 : index
    %c143 = arith.constant 143 : index
    %47 = vector.load %arg6[%c0_25, %c143] : memref<8x512xf32, #tpu.memory_space<vmem>>, vector<4x256xf32>
    %cst_26 = arith.constant 0.000000e+00 : f32
    %48 = vector.shape_cast %13 : vector<1x256xi1> to vector<1x256xi1>
    %49 = vector.broadcast %48 : vector<1x256xi1> to vector<4x256xi1>
    %50 = vector.broadcast %cst_26 : f32 to vector<4x256xf32>
    %51 = arith.select %49, %47, %50 : vector<4x256xi1>, vector<4x256xf32>
    %c24 = arith.constant 24 : index
    %c0_27 = arith.constant 0 : index
    %52 = vector.load %arg7[%c24, %c0_27] : memref<36x512xf32, #tpu.memory_space<vmem>>, vector<4x256xf32>
    tpu.vector_store %arg7[%c24, %c0_27], %51 {strides = array<i32>} : memref<36x512xf32, #tpu.memory_space<vmem>>, vector<4x256xf32>,
    %c0_28 = arith.constant 0 : index
    %c144 = arith.constant 144 : index
    %53 = vector.load %arg6[%c0_28, %c144] : memref<8x512xf32, #tpu.memory_space<vmem>>, vector<4x256xf32>
    %c28 = arith.constant 28 : index
    %c0_29 = arith.constant 0 : index
    %54 = vector.load %arg7[%c28, %c0_29] : memref<36x512xf32, #tpu.memory_space<vmem>>, vector<4x256xf32>
    tpu.vector_store %arg7[%c28, %c0_29], %53 {strides = array<i32>} : memref<36x512xf32, #tpu.memory_space<vmem>>, vector<4x256xf32>,
    %c0_30 = arith.constant 0 : index
    %c145 = arith.constant 145 : index
    %55 = vector.load %arg6[%c0_30, %c145] : memref<8x512xf32, #tpu.memory_space<vmem>>, vector<4x256xf32>
    %cst_31 = arith.constant 0.000000e+00 : f32
    %56 = vector.shape_cast %18 : vector<1x256xi1> to vector<1x256xi1>
    %57 = vector.broadcast %56 : vector<1x256xi1> to vector<4x256xi1>
    %58 = vector.broadcast %cst_31 : f32 to vector<4x256xf32>
    %59 = arith.select %57, %55, %58 : vector<4x256xi1>, vector<4x256xf32>
    %c32 = arith.constant 32 : index
    %c0_32 = arith.constant 0 : index
    %60 = vector.load %arg7[%c32, %c0_32] : memref<36x512xf32, #tpu.memory_space<vmem>>, vector<4x256xf32>
    tpu.vector_store %arg7[%c32, %c0_32], %59 {strides = array<i32>} : memref<36x512xf32, #tpu.memory_space<vmem>>, vector<4x256xf32>,
    %c4_33 = arith.constant 4 : index
    %c111_34 = arith.constant 111 : index
    %61 = vector.load %arg6[%c4_33, %c111_34] : memref<8x512xf32, #tpu.memory_space<vmem>>, vector<4x256xf32>
    %cst_35 = arith.constant 0.000000e+00 : f32
    %62 = vector.shape_cast %13 : vector<1x256xi1> to vector<1x256xi1>
    %63 = vector.broadcast %62 : vector<1x256xi1> to vector<4x256xi1>
    %64 = vector.broadcast %cst_35 : f32 to vector<4x256xf32>
    %65 = arith.select %63, %61, %64 : vector<4x256xi1>, vector<4x256xf32>
    %c0_36 = arith.constant 0 : index
    %c256 = arith.constant 256 : index
    %66 = vector.load %arg7[%c0_36, %c256] : memref<36x512xf32, #tpu.memory_space<vmem>>, vector<4x256xf32>
    tpu.vector_store %arg7[%c0_36, %c256], %65 {strides = array<i32>} : memref<36x512xf32, #tpu.memory_space<vmem>>, vector<4x256xf32>,
    %c4_37 = arith.constant 4 : index
    %c112_38 = arith.constant 112 : index
    %67 = vector.load %arg6[%c4_37, %c112_38] : memref<8x512xf32, #tpu.memory_space<vmem>>, vector<4x256xf32>
    %c4_39 = arith.constant 4 : index
    %c256_40 = arith.constant 256 : index
    %68 = vector.load %arg7[%c4_39, %c256_40] : memref<36x512xf32, #tpu.memory_space<vmem>>, vector<4x256xf32>
    tpu.vector_store %arg7[%c4_39, %c256_40], %67 {strides = array<i32>} : memref<36x512xf32, #tpu.memory_space<vmem>>, vector<4x256xf32>,
    %c4_41 = arith.constant 4 : index
    %c113_42 = arith.constant 113 : index
    %69 = vector.load %arg6[%c4_41, %c113_42] : memref<8x512xf32, #tpu.memory_space<vmem>>, vector<4x256xf32>
    %cst_43 = arith.constant 0.000000e+00 : f32
    %70 = vector.shape_cast %18 : vector<1x256xi1> to vector<1x256xi1>
    %71 = vector.broadcast %70 : vector<1x256xi1> to vector<4x256xi1>
    %72 = vector.broadcast %cst_43 : f32 to vector<4x256xf32>
    %73 = arith.select %71, %69, %72 : vector<4x256xi1>, vector<4x256xf32>
    %c8_44 = arith.constant 8 : index
    %c256_45 = arith.constant 256 : index
    %74 = vector.load %arg7[%c8_44, %c256_45] : memref<36x512xf32, #tpu.memory_space<vmem>>, vector<4x256xf32>
    tpu.vector_store %arg7[%c8_44, %c256_45], %73 {strides = array<i32>} : memref<36x512xf32, #tpu.memory_space<vmem>>, vector<4x256xf32>,
    %c4_46 = arith.constant 4 : index
    %c127_47 = arith.constant 127 : index
    %75 = vector.load %arg6[%c4_46, %c127_47] : memref<8x512xf32, #tpu.memory_space<vmem>>, vector<4x256xf32>
    %cst_48 = arith.constant 0.000000e+00 : f32
    %76 = vector.shape_cast %13 : vector<1x256xi1> to vector<1x256xi1>
    %77 = vector.broadcast %76 : vector<1x256xi1> to vector<4x256xi1>
    %78 = vector.broadcast %cst_48 : f32 to vector<4x256xf32>
    %79 = arith.select %77, %75, %78 : vector<4x256xi1>, vector<4x256xf32>
    %c12_49 = arith.constant 12 : index
    %c256_50 = arith.constant 256 : index
    %80 = vector.load %arg7[%c12_49, %c256_50] : memref<36x512xf32, #tpu.memory_space<vmem>>, vector<4x256xf32>
    tpu.vector_store %arg7[%c12_49, %c256_50], %79 {strides = array<i32>} : memref<36x512xf32, #tpu.memory_space<vmem>>, vector<4x256xf32>,
    %c4_51 = arith.constant 4 : index
    %c128_52 = arith.constant 128 : index
    %81 = vector.load %arg6[%c4_51, %c128_52] : memref<8x512xf32, #tpu.memory_space<vmem>>, vector<4x256xf32>
    %c16_53 = arith.constant 16 : index
    %c256_54 = arith.constant 256 : index
    %82 = vector.load %arg7[%c16_53, %c256_54] : memref<36x512xf32, #tpu.memory_space<vmem>>, vector<4x256xf32>
    tpu.vector_store %arg7[%c16_53, %c256_54], %81 {strides = array<i32>} : memref<36x512xf32, #tpu.memory_space<vmem>>, vector<4x256xf32>,
    %c4_55 = arith.constant 4 : index
    %c129_56 = arith.constant 129 : index
    %83 = vector.load %arg6[%c4_55, %c129_56] : memref<8x512xf32, #tpu.memory_space<vmem>>, vector<4x256xf32>
    %cst_57 = arith.constant 0.000000e+00 : f32
    %84 = vector.shape_cast %18 : vector<1x256xi1> to vector<1x256xi1>
    %85 = vector.broadcast %84 : vector<1x256xi1> to vector<4x256xi1>
    %86 = vector.broadcast %cst_57 : f32 to vector<4x256xf32>
    %87 = arith.select %85, %83, %86 : vector<4x256xi1>, vector<4x256xf32>
    %c20_58 = arith.constant 20 : index
    %c256_59 = arith.constant 256 : index
    %88 = vector.load %arg7[%c20_58, %c256_59] : memref<36x512xf32, #tpu.memory_space<vmem>>, vector<4x256xf32>
    tpu.vector_store %arg7[%c20_58, %c256_59], %87 {strides = array<i32>} : memref<36x512xf32, #tpu.memory_space<vmem>>, vector<4x256xf32>,
    %c4_60 = arith.constant 4 : index
    %c143_61 = arith.constant 143 : index
    %89 = vector.load %arg6[%c4_60, %c143_61] : memref<8x512xf32, #tpu.memory_space<vmem>>, vector<4x256xf32>
    %cst_62 = arith.constant 0.000000e+00 : f32
    %90 = vector.shape_cast %13 : vector<1x256xi1> to vector<1x256xi1>
    %91 = vector.broadcast %90 : vector<1x256xi1> to vector<4x256xi1>
    %92 = vector.broadcast %cst_62 : f32 to vector<4x256xf32>
    %93 = arith.select %91, %89, %92 : vector<4x256xi1>, vector<4x256xf32>
    %c24_63 = arith.constant 24 : index
    %c256_64 = arith.constant 256 : index
    %94 = vector.load %arg7[%c24_63, %c256_64] : memref<36x512xf32, #tpu.memory_space<vmem>>, vector<4x256xf32>
    tpu.vector_store %arg7[%c24_63, %c256_64], %93 {strides = array<i32>} : memref<36x512xf32, #tpu.memory_space<vmem>>, vector<4x256xf32>,
    %c4_65 = arith.constant 4 : index
    %c144_66 = arith.constant 144 : index
    %95 = vector.load %arg6[%c4_65, %c144_66] : memref<8x512xf32, #tpu.memory_space<vmem>>, vector<4x256xf32>
    %c28_67 = arith.constant 28 : index
    %c256_68 = arith.constant 256 : index
    %96 = vector.load %arg7[%c28_67, %c256_68] : memref<36x512xf32, #tpu.memory_space<vmem>>, vector<4x256xf32>
    tpu.vector_store %arg7[%c28_67, %c256_68], %95 {strides = array<i32>} : memref<36x512xf32, #tpu.memory_space<vmem>>, vector<4x256xf32>,
    %c4_69 = arith.constant 4 : index
    %c145_70 = arith.constant 145 : index
    %97 = vector.load %arg6[%c4_69, %c145_70] : memref<8x512xf32, #tpu.memory_space<vmem>>, vector<4x256xf32>
    %cst_71 = arith.constant 0.000000e+00 : f32
    %98 = vector.shape_cast %18 : vector<1x256xi1> to vector<1x256xi1>
    %99 = vector.broadcast %98 : vector<1x256xi1> to vector<4x256xi1>
    %100 = vector.broadcast %cst_71 : f32 to vector<4x256xf32>
    %101 = arith.select %99, %97, %100 : vector<4x256xi1>, vector<4x256xf32>
    %c32_72 = arith.constant 32 : index
    %c256_73 = arith.constant 256 : index
    %102 = vector.load %arg7[%c32_72, %c256_73] : memref<36x512xf32, #tpu.memory_space<vmem>>, vector<4x256xf32>
    tpu.vector_store %arg7[%c32_72, %c256_73], %101 {strides = array<i32>} : memref<36x512xf32, #tpu.memory_space<vmem>>, vector<4x256xf32>,
    %c0_74 = arith.constant 0 : index
    %c0_75 = arith.constant 0 : index
    %103 = vector.load %arg2[%c0_74, %c0_75] : memref<8x36xf32, #tpu.memory_space<vmem>>, vector<8x36xf32>
    %c0_76 = arith.constant 0 : index
    %c0_77 = arith.constant 0 : index
    %104 = vector.load %arg7[%c0_76, %c0_77] : memref<36x512xf32, #tpu.memory_space<vmem>>, vector<36x512xf32>
    %cst_78 = arith.constant dense<0.000000e+00> : vector<8x512xf32>
    %105 = tpu.matmul %103, %104, %cst_78 {dimension_numbers = #tpu.dot_dimension_numbers<[1], [0], [0], [1], [0, 0, 1, 1], [], []>} : vector<8x36xf32>, vector<36x512xf32>, vector<8x512xf32> -> vector<8x512xf32>
    %cst_79 = arith.constant dense<0.000000e+00> : vector<8xf32>
    %106 = vector.multi_reduction <add>, %105, %cst_79 [1] : vector<8x512xf32> to vector<8xf32>
    %107 = vector.shape_cast %106 : vector<8xf32> to vector<8x1xf32>
    %cst_80 = arith.constant 0.001953125 : f32
    %108 = vector.broadcast %cst_80 : f32 to vector<8x1xf32>
    %109 = arith.mulf %107, %108 : vector<8x1xf32>
    %110 = vector.broadcast %109 : vector<8x1xf32> to vector<8x512xf32>
    %111 = arith.subf %105, %110 : vector<8x512xf32>
    %112 = arith.mulf %111, %111 : vector<8x512xf32>
    %cst_81 = arith.constant dense<0.000000e+00> : vector<8xf32>
    %113 = vector.multi_reduction <add>, %112, %cst_81 [1] : vector<8x512xf32> to vector<8xf32>
    %114 = vector.shape_cast %113 : vector<8xf32> to vector<8x1xf32>
    %cst_82 = arith.constant 0.001953125 : f32
    %115 = vector.broadcast %cst_82 : f32 to vector<8x1xf32>
    %116 = arith.mulf %114, %115 : vector<8x1xf32>
    %c0_83 = arith.constant 0 : index
    %c0_84 = arith.constant 0 : index
    %117 = vector.load %arg3[%c0_83, %c0_84] : memref<8x1xf32, #tpu.memory_space<vmem>>, vector<8x1xf32>
    %cst_85 = arith.constant 9.99999974E-6 : f32
    %118 = vector.broadcast %cst_85 : f32 to vector<8x1xf32>
    %119 = arith.addf %116, %118 : vector<8x1xf32>
    %120 = math.rsqrt %119 : vector<8x1xf32>
    %121 = arith.mulf %117, %120 : vector<8x1xf32>
    %122 = vector.broadcast %121 : vector<8x1xf32> to vector<8x512xf32>
    %123 = arith.mulf %111, %122 : vector<8x512xf32>
    %c0_86 = arith.constant 0 : index
    %c0_87 = arith.constant 0 : index
    %124 = vector.load %arg4[%c0_86, %c0_87] : memref<8x1xf32, #tpu.memory_space<vmem>>, vector<8x1xf32>
    %125 = vector.broadcast %124 : vector<8x1xf32> to vector<8x512xf32>
    %126 = arith.addf %123, %125 : vector<8x512xf32>
    %cst_88 = arith.constant 0.000000e+00 : f32
    %127 = vector.broadcast %cst_88 : f32 to vector<8x512xf32>
    %128 = arith.maximumf %126, %127 : vector<8x512xf32>
    %129 = vector.extract_strided_slice %128 {offsets = [0, 0], sizes = [8, 256], strides = [1, 1]} : vector<8x512xf32> to vector<8x256xf32>
    %c0_89 = arith.constant 0 : index
    %c0_90 = arith.constant 0 : index
    %c0_91 = arith.constant 0 : index
    %130 = vector.load %arg5[%c0_89, %c0_90, %c0_91] : memref<2x8x256xf32, #tpu.memory_space<vmem>>, vector<1x8x256xf32>
    %131 = vector.shape_cast %130 : vector<1x8x256xf32> to vector<8x256xf32>
    %132 = vector.shape_cast %129 : vector<8x256xf32> to vector<1x8x256xf32>
    tpu.vector_store %arg5[%c0_89, %c0_90, %c0_91], %132 {strides = array<i32>} : memref<2x8x256xf32, #tpu.memory_space<vmem>>, vector<1x8x256xf32>,
    %133 = vector.extract_strided_slice %128 {offsets = [0, 256], sizes = [8, 256], strides = [1, 1]} : vector<8x512xf32> to vector<8x256xf32>
    %c1 = arith.constant 1 : index
    %c0_92 = arith.constant 0 : index
    %c0_93 = arith.constant 0 : index
    %134 = vector.load %arg5[%c1, %c0_92, %c0_93] : memref<2x8x256xf32, #tpu.memory_space<vmem>>, vector<1x8x256xf32>
    %135 = vector.shape_cast %134 : vector<1x8x256xf32> to vector<8x256xf32>
    %136 = vector.shape_cast %133 : vector<8x256xf32> to vector<1x8x256xf32>
    tpu.vector_store %arg5[%c1, %c0_92, %c0_93], %136 {strides = array<i32>} : memref<2x8x256xf32, #tpu.memory_space<vmem>>, vector<1x8x256xf32>,
    return
  }
  func.func @transform_0(%arg0: i32) -> (i32, i32) {
    %c0_i32 = arith.constant 0 : i32
    %c0_i32_0 = arith.constant 0 : i32
    %c0_i32_1 = arith.constant 0 : i32
    return %c0_i32, %c0_i32_0 : i32, i32
  }
  func.func @transform_1(%arg0: i32) -> (i32, i32) {
    %c0_i32 = arith.constant 0 : i32
    %c0_i32_0 = arith.constant 0 : i32
    %c0_i32_1 = arith.constant 0 : i32
    return %c0_i32, %c0_i32_0 : i32, i32
  }
  func.func @transform_2(%arg0: i32) -> (i32, i32) {
    %c0_i32 = arith.constant 0 : i32
    %c0_i32_0 = arith.constant 0 : i32
    %c0_i32_1 = arith.constant 0 : i32
    return %c0_i32, %c0_i32_0 : i32, i32
  }
  func.func @transform_3(%arg0: i32) -> (i32, i32) {
    %c0_i32 = arith.constant 0 : i32
    %c0_i32_0 = arith.constant 0 : i32
    %c0_i32_1 = arith.constant 0 : i32
    return %c0_i32, %c0_i32_0 : i32, i32
  }
  func.func @transform_4(%arg0: i32) -> (i32, i32, i32) {
    %c0_i32 = arith.constant 0 : i32
    %c0_i32_0 = arith.constant 0 : i32
    %c0_i32_1 = arith.constant 0 : i32
    %c0_i32_2 = arith.constant 0 : i32
    return %c0_i32, %c0_i32_0, %c0_i32_1 : i32, i32, i32
  }
}

</mosaic_0001>

<bundles_post_ra>
// kernel: tpu_custom_call.1
= control target key start
LH: loop header
LB: loop body
LE: loop exit
PB: predicated region body
PF: predicated region fallthrough
CT: control target
= control target key end

     0   :  { %9 = vsyncpa [#allocation5], 0  ;;  %s992_s0 = inlined_call_operand.vmem [shape: f32[8,256], index: 0, kind: input, shape index: {}]   ;;  %s993_s1 = inlined_call_operand.hbm [shape: f32[8,36], index: 1, kind: input, shape index: {}]   ;;  %s994_s2 = inlined_call_operand.vmem [shape: f32[8,1], index: 2, kind: input, shape index: {}]   ;;  %s995_s3 = inlined_call_operand.vmem [shape: f32[8,1], index: 3, kind: input, shape index: {}]   ;;  %s996_s4 = inlined_call_operand.hbm [shape: f32[2,8,256], index: 4, kind: output, shape index: {}]  }
   0x1   :  { %10 = vsyncpa [#allocation6], 0  ;;  %s779_s15 = smov [#allocation4]   ;;  %s731_s19 = scalar_lea.hbm %s993_s1, 128 }
   0x2   :  { %s19_s16 = sshll.u32 %s779_s15, 4  ;;  %p732_p0 = scmp.ne.s32.totalorder %s993_s1, %s731_s19  ;;  %s20_s16 = int_to_ptr.vmem [resolvable:$true] %s19_s16 }
   0x3   :  { %p735_p1 = scmp.lt.u32.totalorder %s731_s19, %s993_s1 }
   0x5   :  { %p737_p2 = pnand %p735_p1, %p732_p0 }
   0x7   :  { %740 = shalt.err (!%p737_p2)
}
   0x8   :  { %s741_s24 = scalar_lea.vmem %s20_s16, 128  ;;  %p746_p4 = scmp.lt.s32.totalorder %s20_s16, %s20_s16 }
   0x9   :  { %p742_p3 = scmp.ne.s32.totalorder %s20_s16, %s741_s24  ;;  %p747_p5 = scmp.lt.s32.totalorder %s741_s24, %s741_s24 }
   0xb   :  { %p748_p6 = por %p747_p5, %p746_p4 }
   0xd   :  { %p749_p7 = pnand %p748_p6, %p742_p3 }
   0xf   :  { %752 = shalt.err (!%p749_p7)
}
  0x10   :  { %22 = dma.hbm_to_vmem [thread:$0]  %s993_s1, 128, %s20_s16, [#allocation5]  }
  0x11   :  { %775 = dma.done.wait [#allocation5], 128  }
  0x12   :  { %776 = vsyncadd [#allocation5], 4294967168  ;;  %v780_v0 = vmov 0.0   ;;  %v32_v1 = vld [vmem:[%s992_s0] sm:$0xff]  ;;  %v33_v2 = vld [vmem:[%s992_s0 + $0x8] sm:$0xff]  ;;  %s781_s5 = smov 1  }
  0x13   :  { %30 = vst [vmem:[#allocation2] sm:$0xff] %v780_v0  ;;  %31 = vst [vmem:[#allocation2 + $0x18] sm:$0xff] %v780_v0  ;;  %545 = vmatprep.mubr.f32.mxu0 %v780_v0  ;;  %616 = vmatprep.mubr.f32.mxu1 %v780_v0  ;;  %s782_s1 = smov 17   ;;  %s783_s0 = smov 15   ;;  %vm137_vm0 = vcmask 7168   ;;  %vm69_vm2 = vcmask 138240  }
  0x14   :  { %34 = vst [vmem:[#allocation2 + $0x8] sm:$0xff] %v32_v1  ;;  %35 = vst [vmem:[#allocation2 + $0x10] sm:$0xff] %v33_v2  ;;  %s784_s6 = smov 16   ;;  %s785_s7 = smov 127   ;;  %vm116_vm4 = vcmask 121856   ;;  %vm93_vm6 = vcmask 130048  }
  0x15   :  { %s786_s8 = smov 113   ;;  %s787_s9 = smov 112   ;;  %vm168_vm8 = vcmask 1039360   ;;  %vm195_vm9 = vcmask 924672   ;;  %vm219_vm10 = vcmask 916480   ;;  %vm238_vm11 = vcmask 908288  }
  0x16   :  { %s788_s10 = smov 111   ;;  %vm468_vm12 = vcmask 1043456   ;;  %vm464_vm13 = vcmask 293888   ;;  %s790_s15 = smov [#allocation7]  }
  0x1a   :  { %v125_v3 = vld [vmem:[#allocation2] sm:$0xf]  ;;  %v158_v21 = vld [vmem:[#allocation2 + $0x18] sm:$0xf]  ;;  %v311_v29 = vld [vmem:[#allocation2] sm:$0xf0] }
  0x1b   :  { %131 = vrot.lane.b32.xlu1 %v125_v3, %s781_s5  ;;  %v53_v4 = vld [vmem:[#allocation2] sm:$0xf]  ;;  %v126_v5 = vld [vmem:[#allocation2 + $0x8] sm:$0xf]  ;;  %v127_v7 = vld [vmem:[#allocation2 + $0x10] sm:$0xf] }
  0x1c   :  { %v54_v6 = vld [vmem:[#allocation2 + $0x8] sm:$0xf]  ;;  %133 = vrot.lane.b32.xlu0 %v126_v5, %s781_s5  ;;  %v80_v9 = vld [vmem:[#allocation2 + $0x10] sm:$0xf]  ;;  %v312_v12 = vld [vmem:[#allocation2 + $0x8] sm:$0xf0] }
  0x1d   :  { %v101_v8 = vld [vmem:[#allocation2 + $0x8] sm:$0xf]  ;;  %v55_v10 = vld [vmem:[#allocation2 + $0x10] sm:$0xf]  ;;  %v86_v11 = vrot.slane %v80_v9, 4  ;;  %v318_v14 = vrot.slane %v312_v12, 4 }
  0x1e   :  { %v102_v13 = vld [vmem:[#allocation2 + $0x10] sm:$0xf]  ;;  %v79_v15 = vld [vmem:[#allocation2 + $0x8] sm:$0xf]  ;;  %v78_v16 = vld [vmem:[#allocation2] sm:$0xf] }
  0x1f   :  { %63 = vrot.lane.b32.xlu1 %v53_v4, %s782_s1  ;;  %v85_v17 = vrot.slane %v79_v15, 4  ;;  %v84_v18 = vrot.slane %v78_v16, 4  ;;  %v100_v19 = vld [vmem:[#allocation2] sm:$0xf]  ;;  %v313_v20 = vld [vmem:[#allocation2 + $0x10] sm:$0xf0] }
  0x20   :  { %135 = vrot.lane.b32.xlu0 %v127_v7, %s781_s5  ;;  %v153_v22 = vld [vmem:[#allocation2 + $0x10] sm:$0xf]  ;;  %v152_v23 = vld [vmem:[#allocation2 + $0x8] sm:$0xf]  ;;  %v319_v24 = vrot.slane %v313_v20, 4  ;;  %v317_v31 = vrot.slane %v311_v29, 4 }
  0x21   :  { %155 = vst [vmem:[#allocation3 + $0x48] sm:$0xf] %v153_v22  ;;  %154 = vst [vmem:[#allocation3 + $0x40] sm:$0xf] %v152_v23  ;;  %v156_v25 = vld [vmem:[#allocation2 + $0x8] sm:$0xf] }
  0x22   :  { %v249_v26 = vld [vmem:[#allocation2 + $0x10] sm:$0xf0]  ;;  %v157_v27 = vld [vmem:[#allocation2 + $0x10] sm:$0xf]  ;;  %v248_v33 = vld [vmem:[#allocation2 + $0x8] sm:$0xf0] }
  0x23   :  { %65 = vrot.lane.b32.xlu1 %v54_v6, %s782_s1  ;;  %v255_v28 = vrot.slane %v249_v26, 4  ;;  %v290_v30 = vld [vmem:[#allocation2 + $0x10] sm:$0xf0]  ;;  %v254_v34 = vrot.slane %v248_v33, 4  ;;  %v289_v35 = vld [vmem:[#allocation2 + $0x8] sm:$0xf0] }
  0x24   :  { %67 = vrot.lane.b32.xlu0 %v55_v10, %s782_s1  ;;  %v296_v32 = vrot.slane %v290_v30, 4  ;;  %v185_v36 = vld [vmem:[#allocation2 + $0x18] sm:$0xf]  ;;  %v295_v37 = vrot.slane %v289_v35, 4  ;;  %v271_v38 = vld [vmem:[#allocation2 + $0x8] sm:$0xf0] }
  0x25   :  { %v288_v39 = vld [vmem:[#allocation2] sm:$0xf0]  ;;  %v184_v40 = vld [vmem:[#allocation2 + $0x10] sm:$0xf]  ;;  %v272_v46 = vld [vmem:[#allocation2 + $0x10] sm:$0xf0] }
  0x26   :  { %v294_v41 = vrot.slane %v288_v39, 4  ;;  %v247_v42 = vld [vmem:[#allocation2] sm:$0xf0]  ;;  %v205_v43 = vld [vmem:[#allocation2 + $0x10] sm:$0xf] }
  0x27   :  { %112 = vrot.lane.b32.xlu1 %v101_v8, %s783_s0  ;;  %v253_v44 = vrot.slane %v247_v42, 4  ;;  %v211_v45 = vrot.slane %v205_v43, 4  ;;  %v270_v47 = vld [vmem:[#allocation2] sm:$0xf0]  ;;  %v352_v48 = vld [vmem:[#allocation2 + $0x18] sm:$0xf0] }
  0x28   :  { %114 = vrot.lane.b32.xlu0 %v102_v13, %s783_s0  ;;  %v206_v49 = vld [vmem:[#allocation2 + $0x18] sm:$0xf]  ;;  %v341_v50 = vld [vmem:[#allocation2 + $0x10] sm:$0xf0]  ;;  %v340_v51 = vld [vmem:[#allocation2 + $0x8] sm:$0xf0] }
  0x29   :  { %v183_v52 = vld [vmem:[#allocation2 + $0x8] sm:$0xf]  ;;  %v358_v53 = vrot.slane %v352_v48, 4  ;;  %v345_v54 = vrot.slane %v341_v50, 4  ;;  %v344_v55 = vrot.slane %v340_v51, 4  ;;  %v212_v57 = vrot.slane %v206_v49, 4 }
  0x2a   :  { %v350_v56 = vld [vmem:[#allocation2 + $0x8] sm:$0xf0]  ;;  %v351_v58 = vld [vmem:[#allocation2 + $0x10] sm:$0xf0]  ;;  %v381_v60 = vld [vmem:[#allocation2 + $0x18] sm:$0xf0] }
  0x2b   :  { %91 = vrot.lane.b32.xlu1 %v86_v11, %s784_s6  ;;  %349 = vst [vmem:[#allocation3 + $0x58] sm:$0xf] %v345_v54  ;;  %348 = vst [vmem:[#allocation3 + $0x50] sm:$0xf] %v344_v55  ;;  %v356_v59 = vrot.slane %v350_v56, 4  ;;  %v357_v61 = vrot.slane %v351_v58, 4 }
  0x2c   :  { %89 = vrot.lane.b32.xlu0 %v85_v17, %s784_s6  ;;  %v204_v62 = vld [vmem:[#allocation2 + $0x8] sm:$0xf]  ;;  %v387_v63 = vrot.slane %v381_v60, 4  ;;  %v380_v1 = vld [vmem:[#allocation2 + $0x10] sm:$0xf0]  ;;  %v36_v17 = vlaneseq }
  0x2d   :  { %v210_v0 = vrot.slane %v204_v62, 4  ;;  %v403_v2 = vld [vmem:[#allocation2 + $0x10] sm:$0xf0]  ;;  %v386_v3 = vrot.slane %v380_v1, 4  ;;  %v379_v4 = vld [vmem:[#allocation2 + $0x8] sm:$0xf0] }
  0x2e   :  { %v402_v5 = vld [vmem:[#allocation2 + $0x8] sm:$0xf0]  ;;  %v385_v6 = vrot.slane %v379_v4, 4  ;;  %v228_v7 = vld [vmem:[#allocation2 + $0x18] sm:$0xf] }
  0x2f   :  { %322 = vrot.lane.b32.xlu1 %v318_v14, %s781_s5  ;;  %v421_v8 = vld [vmem:[#allocation2 + $0x10] sm:$0xf0]  ;;  %v404_v9 = vld [vmem:[#allocation2 + $0x18] sm:$0xf0]  ;;  %v420_v11 = vld [vmem:[#allocation2 + $0x8] sm:$0xf0] }
  0x30   :  { %110 = vrot.lane.b32.xlu0 %v100_v19, %s783_s0  ;;  %v427_v10 = vrot.slane %v421_v8, 4  ;;  %v227_v12 = vld [vmem:[#allocation2 + $0x10] sm:$0xf]  ;;  %v426_v13 = vrot.slane %v420_v11, 4  ;;  %v226_v14 = vld [vmem:[#allocation2 + $0x8] sm:$0xf] }
  0x31   :  { %v422_v15 = vld [vmem:[#allocation2 + $0x18] sm:$0xf0] }
  0x32   :  { %v428_v16 = vrot.slane %v422_v15, 4 }
  0x33   :  { %87 = vrot.lane.b32.xlu1 %v84_v18, %s784_s6  ;;  %v37_v18 = vand.u32 127, %v36_v17 }
  0x34   :  { %324 = vrot.lane.b32.xlu0 %v319_v24, %s781_s5 }
  0x35   :  { %v39_v20 = vand.u32 15, %v37_v18 }
  0x37   :  { %166 = vrot.lane.b32.xlu1 %v158_v21, %s785_s7  ;;  %v38_v21 = vadd.s32 128, %v37_v18  ;;  %vm877_vm1 = vcmp.ge.s32.totalorder %v39_v20, 1  ;;  %vm906_vm7 = vcmp.lt.s32.totalorder %v39_v20, 15 }
  0x38   :  { %164 = vrot.lane.b32.xlu0 %v157_v27, %s785_s7 }
  0x39   :  { %v40_v24 = vand.u32 15, %v38_v21 }
  0x3b   :  { %162 = vrot.lane.b32.xlu1 %v156_v25, %s785_s7  ;;  %vm887_vm3 = vcmp.ge.s32.totalorder %v40_v24, 1  ;;  %vm897_vm5 = vcmp.lt.s32.totalorder %v40_v24, 15 }
  0x3c   :  { %320 = vrot.lane.b32.xlu0 %v317_v31, %s781_s5 }
  0x3f   :  { %260 = vrot.lane.b32.xlu1 %v255_v28, %s782_s1 }
  0x40   :  { %258 = vrot.lane.b32.xlu0 %v254_v34, %s782_s1 }
  0x43   :  { %301 = vrot.lane.b32.xlu1 %v296_v32, %s783_s0 }
  0x44   :  { %299 = vrot.lane.b32.xlu0 %v295_v37, %s783_s0 }
  0x47   :  { %193 = vrot.lane.b32.xlu1 %v185_v36, %s786_s8 }
  0x48   :  { %191 = vrot.lane.b32.xlu0 %v184_v40, %s786_s8 }
  0x4b   :  { %278 = vrot.lane.b32.xlu1 %v271_v38, %s784_s6 }
  0x4c   :  { %256 = vrot.lane.b32.xlu0 %v253_v44, %s782_s1 }
  0x4f   :  { %297 = vrot.lane.b32.xlu1 %v294_v41, %s783_s0 }
  0x50   :  { %280 = vrot.lane.b32.xlu0 %v272_v46, %s784_s6 }
  0x53   :  { %215 = vrot.lane.b32.xlu1 %v211_v45, %s787_s9 }
  0x54   :  { %189 = vrot.lane.b32.xlu0 %v183_v52, %s786_s8 }
  0x57   :  { %276 = vrot.lane.b32.xlu1 %v270_v47, %s784_s6 }
  0x58   :  { %217 = vrot.lane.b32.xlu0 %v212_v57, %s787_s9 }
  0x5b   :  { %363 = vrot.lane.b32.xlu1 %v358_v53, %s785_s7 }
  0x5c   :  { %361 = vrot.lane.b32.xlu0 %v357_v61, %s785_s7 }
  0x5f   :  { %359 = vrot.lane.b32.xlu1 %v356_v59, %s785_s7 }
  0x60   :  { %213 = vrot.lane.b32.xlu0 %v210_v0, %s787_s9 }
  0x63   :  { %392 = vrot.lane.b32.xlu1 %v387_v63, %s786_s8 }
  0x64   :  { %390 = vrot.lane.b32.xlu0 %v386_v3, %s786_s8 }
  0x67   :  { %410 = vrot.lane.b32.xlu1 %v403_v2, %s787_s9 }
  0x68   :  { %388 = vrot.lane.b32.xlu0 %v385_v6, %s786_s8 }
  0x6b   :  { %408 = vrot.lane.b32.xlu1 %v402_v5, %s787_s9 }
  0x6c   :  { %412 = vrot.lane.b32.xlu0 %v404_v9, %s787_s9 }
  0x6f   :  { %236 = vrot.lane.b32.xlu1 %v228_v7, %s788_s10 }
  0x70   :  { %234 = vrot.lane.b32.xlu0 %v227_v12, %s788_s10 }
  0x73   :  { %431 = vrot.lane.b32.xlu1 %v427_v10, %s788_s10 }
  0x74   :  { %232 = vrot.lane.b32.xlu0 %v226_v14, %s788_s10 }
  0x77   :  { %429 = vrot.lane.b32.xlu1 %v426_v13, %s788_s10 }
  0x78   :  { %433 = vrot.lane.b32.xlu0 %v428_v16, %s788_s10 }
  0x8d   :  { %v132_v19 = vpop.permute.xlu1 %131 }
  0x8e   :  { %v134_v25 = vpop.permute.xlu0 %133 }
  0x8f   :  { %v138_v26 = vsel %vm137_vm0, %v132_v19, %v134_v25 }
  0x90   :  { %v142_v28 = vsel %vm877_vm1, %v138_v26, 0.0 }
  0x91   :  { %v64_v22 = vpop.permute.xlu1 %63  ;;  %v146_v30 = vrot.slane %v142_v28, 4 }
  0x92   :  { %v136_v33 = vpop.permute.xlu0 %135 }
  0x93   :  { %150 = vst [vmem:[#allocation3 + $0x20] sm:$0xf0] %v146_v30  ;;  %v139_v34 = vsel %vm137_vm0, %v134_v25, %v136_v33 }
  0x94   :  { %v143_v36 = vsel %vm887_vm3, %v139_v34, 0.0 }
  0x95   :  { %v66_v27 = vpop.permute.xlu1 %65  ;;  %v147_v37 = vrot.slane %v143_v36, 4 }
  0x96   :  { %v70_v29 = vsel %vm69_vm2, %v64_v22, %v66_v27  ;;  %v68_v38 = vpop.permute.xlu0 %67 }
  0x97   :  { %v74_v31 = vsel %vm877_vm1, %v70_v29, 0.0  ;;  %151 = vst [vmem:[#allocation3 + $0x28] sm:$0xf0] %v147_v37  ;;  %v71_v39 = vsel %vm69_vm2, %v66_v27, %v68_v38 }
  0x98   :  { %76 = vst [vmem:[#allocation3] sm:$0xf] %v74_v31  ;;  %v75_v41 = vsel %vm887_vm3, %v71_v39, 0.0 }
  0x99   :  { %v113_v35 = vpop.permute.xlu1 %112  ;;  %77 = vst [vmem:[#allocation3 + $0x8] sm:$0xf] %v75_v41 }
  0x9a   :  { %v115_v43 = vpop.permute.xlu0 %114 }
  0x9b   :  { %v118_v44 = vsel %vm116_vm4, %v113_v35, %v115_v43 }
  0x9c   :  { %v122_v46 = vsel %vm897_vm5, %v118_v44, 0.0 }
  0x9d   :  { %v92_v40 = vpop.permute.xlu1 %91  ;;  %124 = vst [vmem:[#allocation3 + $0x28] sm:$0xf] %v122_v46 }
  0x9e   :  { %v90_v47 = vpop.permute.xlu0 %89 }
  0x9f   :  { %v95_v48 = vsel %vm93_vm6, %v90_v47, %v92_v40 }
  0xa0   :  { %99 = vst [vmem:[#allocation3 + $0x8] sm:$0xf0] %v95_v48 }
  0xa1   :  { %v323_v45 = vpop.permute.xlu1 %322 }
  0xa2   :  { %v111_v52 = vpop.permute.xlu0 %110 }
  0xa3   :  { %v117_v53 = vsel %vm116_vm4, %v111_v52, %v113_v35 }
  0xa4   :  { %v121_v55 = vsel %vm906_vm7, %v117_v53, 0.0  ;;  %v449_v60 = vld [vmem:[#allocation3 + $0x28] sm:$0xff] }
  0xa5   :  { %v88_v49 = vpop.permute.xlu1 %87  ;;  %123 = vst [vmem:[#allocation3 + $0x20] sm:$0xf] %v121_v55 }
  0xa6   :  { %v94_v50 = vsel %vm93_vm6, %v88_v49, %v90_v47  ;;  %v325_v56 = vpop.permute.xlu0 %324 }
  0xa7   :  { %98 = vst [vmem:[#allocation3] sm:$0xf0] %v94_v50  ;;  %v327_v57 = vsel %vm137_vm0, %v323_v45, %v325_v56  ;;  %v445_v59 = vld [vmem:[#allocation3 + $0x8] sm:$0xff] }
  0xa8   :  { %v331_v61 = vsel %vm887_vm3, %v327_v57, 0.0  ;;  %v698_v62 = vpack.c.bf16 %v449_v60, %v445_v59 }
  0xa9   :  { %v167_v54 = vpop.permute.xlu1 %166  ;;  %v335_v63 = vrot.slane %v331_v61, 4 }
  0xaa   :  { %v165_v0 = vpop.permute.xlu0 %164  ;;  %699 = vmatprep.subr.bf16.mxu0 %v698_v62 }
  0xab   :  { %339 = vst [vmem:[#allocation3 + $0x38] sm:$0xf0] %v335_v63  ;;  %v170_v2 = vsel %vm168_vm8, %v165_v0, %v167_v54 }
  0xac   :  { %v174_v5 = vsel %vm897_vm5, %v170_v2, 0.0  ;;  %v448_v7 = vld [vmem:[#allocation3 + $0x20] sm:$0xff] }
  0xad   :  { %v163_v58 = vpop.permute.xlu1 %162  ;;  %v178_v9 = vrot.slane %v174_v5, 4 }
  0xae   :  { %v169_v1 = vsel %vm168_vm8, %v163_v58, %v165_v0  ;;  %v444_v6 = vld [vmem:[#allocation3] sm:$0xff]  ;;  %v321_v11 = vpop.permute.xlu0 %320 }
  0xaf   :  { %v173_v4 = vsel %vm906_vm7, %v169_v1, 0.0  ;;  %v700_v10 = vpack.c.bf16 %v448_v7, %v444_v6  ;;  %182 = vst [vmem:[#allocation3 + $0x48] sm:$0xf0] %v178_v9  ;;  %v326_v12 = vsel %vm137_vm0, %v321_v11, %v323_v45 }
  0xb0   :  { %v177_v8 = vrot.slane %v173_v4, 4  ;;  %v330_v14 = vsel %vm877_vm1, %v326_v12, 0.0 }
  0xb1   :  { %v261_v3 = vpop.permute.xlu1 %260  ;;  %701 = vmatpush1.bf16.msra.mxu0 %v700_v10  ;;  %v334_v15 = vrot.slane %v330_v14, 4 }
  0xb2   :  { %181 = vst [vmem:[#allocation3 + $0x40] sm:$0xf0] %v177_v8  ;;  %v259_v16 = vpop.permute.xlu0 %258 }
  0xb3   :  { %338 = vst [vmem:[#allocation3 + $0x30] sm:$0xf0] %v334_v15  ;;  %v263_v17 = vsel %vm69_vm2, %v259_v16, %v261_v3 }
  0xb4   :  { %v267_v19 = vsel %vm887_vm3, %v263_v17, 0.0 }
  0xb5   :  { %v302_v13 = vpop.permute.xlu1 %301  ;;  %269 = vst [vmem:[#allocation3 + $0x18] sm:$0xf] %v267_v19 }
  0xb6   :  { %v300_v20 = vpop.permute.xlu0 %299  ;;  %v453_v1 = vld [vmem:[#allocation3 + $0x48] sm:$0xff] }
  0xb7   :  { %v304_v21 = vsel %vm116_vm4, %v300_v20, %v302_v13 }
  0xb8   :  { %v308_v24 = vsel %vm897_vm5, %v304_v21, 0.0 }
  0xb9   :  { %v194_v18 = vpop.permute.xlu1 %193  ;;  %310 = vst [vmem:[#allocation3 + $0x38] sm:$0xf] %v308_v24  ;;  %v452_v12 = vld [vmem:[#allocation3 + $0x40] sm:$0xff] }
  0xba   :  { %v192_v25 = vpop.permute.xlu0 %191 }
  0xbb   :  { %v197_v26 = vsel %vm195_vm9, %v192_v25, %v194_v18 }
  0xbc   :  { %v201_v28 = vsel %vm887_vm3, %v197_v26, 0.0 }
  0xbd   :  { %v279_v22 = vpop.permute.xlu1 %278  ;;  %203 = vst [vmem:[#allocation3 + $0x68] sm:$0xf] %v201_v28 }
  0xbe   :  { %v257_v31 = vpop.permute.xlu0 %256 }
  0xbf   :  { %v262_v33 = vsel %vm69_vm2, %v257_v31, %v259_v16 }
  0xc0   :  { %v266_v35 = vsel %vm877_vm1, %v262_v33, 0.0  ;;  %v451_v48 = vld [vmem:[#allocation3 + $0x38] sm:$0xff] }
  0xc1   :  { %v298_v27 = vpop.permute.xlu1 %297  ;;  %268 = vst [vmem:[#allocation3 + $0x10] sm:$0xf] %v266_v35 }
  0xc2   :  { %v303_v29 = vsel %vm116_vm4, %v298_v27, %v300_v20  ;;  %v281_v36 = vpop.permute.xlu0 %280 }
  0xc3   :  { %v307_v30 = vsel %vm906_vm7, %v303_v29, 0.0  ;;  %v283_v37 = vsel %vm93_vm6, %v279_v22, %v281_v36 }
  0xc4   :  { %309 = vst [vmem:[#allocation3 + $0x30] sm:$0xf] %v307_v30  ;;  %287 = vst [vmem:[#allocation3 + $0x18] sm:$0xf0] %v283_v37 }
  0xc5   :  { %v216_v34 = vpop.permute.xlu1 %215 }
  0xc6   :  { %v190_v40 = vpop.permute.xlu0 %189 }
  0xc7   :  { %v196_v41 = vsel %vm195_vm9, %v190_v40, %v192_v25 }
  0xc8   :  { %v200_v44 = vsel %vm877_vm1, %v196_v41, 0.0 }
  0xc9   :  { %v277_v38 = vpop.permute.xlu1 %276  ;;  %202 = vst [vmem:[#allocation3 + $0x60] sm:$0xf] %v200_v44 }
  0xca   :  { %v282_v39 = vsel %vm93_vm6, %v277_v38, %v279_v22  ;;  %v218_v45 = vpop.permute.xlu0 %217 }
  0xcb   :  { %286 = vst [vmem:[#allocation3 + $0x10] sm:$0xf0] %v282_v39  ;;  %v221_v46 = vsel %vm219_vm10, %v216_v34, %v218_v45  ;;  %v447_v47 = vld [vmem:[#allocation3 + $0x18] sm:$0xff]  ;;  %v450_v53 = vld [vmem:[#allocation3 + $0x30] sm:$0xff]  ;;  %v443_v39 = vld [vmem:[#allocation4] sm:$0xff] }
  0xcc   :  { %225 = vst [vmem:[#allocation3 + $0x68] sm:$0xf0] %v221_v46  ;;  %v706_v50 = vpack.c.bf16 %v451_v48, %v447_v47 }
  0xcd   :  { %v364_v43 = vpop.permute.xlu1 %363 }
  0xce   :  { %v362_v55 = vpop.permute.xlu0 %361  ;;  %707 = vmatprep.subr.bf16.mxu1 %v706_v50 }
  0xcf   :  { %v366_v56 = vsel %vm168_vm8, %v362_v55, %v364_v43 }
  0xd0   :  { %v370_v59 = vsel %vm897_vm5, %v366_v56, 0.0 }
  0xd1   :  { %v360_v49 = vpop.permute.xlu1 %359  ;;  %v374_v61 = vrot.slane %v370_v59, 4 }
  0xd2   :  { %v446_v52 = vld [vmem:[#allocation3 + $0x10] sm:$0xff]  ;;  %v365_v57 = vsel %vm168_vm8, %v360_v49, %v362_v55  ;;  %v214_v63 = vpop.permute.xlu0 %213 }
  0xd3   :  { %v708_v54 = vpack.c.bf16 %v450_v53, %v446_v52  ;;  %v369_v60 = vsel %vm906_vm7, %v365_v57, 0.0  ;;  %378 = vst [vmem:[#allocation3 + $0x58] sm:$0xf0] %v374_v61  ;;  %v220_v0 = vsel %vm219_vm10, %v214_v63, %v216_v34  ;;  %v457_v2 = vld [vmem:[#allocation3 + $0x68] sm:$0xff]  ;;  %v789_v63 = vmov 0  }
  0xd4   :  { %v373_v62 = vrot.slane %v369_v60, 4  ;;  %224 = vst [vmem:[#allocation3 + $0x60] sm:$0xf0] %v220_v0  ;;  %v702_v4 = vpack.c.bf16 %v457_v2, %v453_v1  ;;  %727 = vset.pattern.permute.xlu0 %v789_v63  ;;  %728 = vset.pattern.permute.xlu1 %v789_v63  ;;  %v656_v0 = vld [vmem:[%s995_s3] sm:$0xff]  ;;  %s680_s3 = sshll.u32 %s790_s15, 4  ;;  %s681_s3 = int_to_ptr.vmem [resolvable:$true] %s680_s3 }
  0xd5   :  { %709 = vmatpush1.bf16.msra.mxu1 %v708_v54  ;;  %v393_v58 = vpop.permute.xlu1 %392  ;;  %p758_p9 = scmp.lt.s32.totalorder %s681_s3, %s681_s3 }
  0xd6   :  { %377 = vst [vmem:[#allocation3 + $0x50] sm:$0xf0] %v373_v62  ;;  %v391_v5 = vpop.permute.xlu0 %390  ;;  %703 = vmatprep.subr.bf16.mxu0 %v702_v4  ;;  %v643_v4 = vld [vmem:[%s994_s2] sm:$0xff]  ;;  %s753_s2 = scalar_lea.vmem %s681_s3, 512 }
  0xd7   :  { %v395_v6 = vsel %vm195_vm9, %v391_v5, %v393_v58  ;;  %p754_p8 = scmp.ne.s32.totalorder %s681_s3, %s753_s2  ;;  %p759_p10 = scmp.lt.s32.totalorder %s753_s2, %s753_s2 }
  0xd8   :  { %v399_v8 = vsel %vm887_vm3, %v395_v6, 0.0 }
  0xd9   :  { %v411_v3 = vpop.permute.xlu1 %410  ;;  %401 = vst [vmem:[#allocation3 + $0x78] sm:$0xf] %v399_v8  ;;  %p760_p11 = por %p759_p10, %p758_p9 }
  0xda   :  { %v389_v10 = vpop.permute.xlu0 %388  ;;  %v455_v28 = vld [vmem:[#allocation3 + $0x58] sm:$0xff] }
  0xdb   :  { %v394_v11 = vsel %vm195_vm9, %v389_v10, %v391_v5  ;;  %v456_v13 = vld [vmem:[#allocation3 + $0x60] sm:$0xff]  ;;  %p761_p12 = pnand %p760_p11, %p754_p8 }
  0xdc   :  { %v398_v15 = vsel %vm877_vm1, %v394_v11, 0.0  ;;  %v704_v16 = vpack.c.bf16 %v456_v13, %v452_v12 }
  0xdd   :  { %v409_v7 = vpop.permute.xlu1 %408  ;;  %400 = vst [vmem:[#allocation3 + $0x70] sm:$0xf] %v398_v15  ;;  %v454_v33 = vld [vmem:[#allocation3 + $0x50] sm:$0xff] }
  0xde   :  { %v414_v9 = vsel %vm219_vm10, %v409_v7, %v411_v3  ;;  %v413_v17 = vpop.permute.xlu0 %412  ;;  %705 = vmatpush1.bf16.msra.mxu0 %v704_v16 }
  0xdf   :  { %418 = vst [vmem:[#allocation3 + $0x70] sm:$0xf0] %v414_v9  ;;  %v415_v32 = vsel %vm219_vm10, %v411_v3, %v413_v17 }
  0xe0   :  { %419 = vst [vmem:[#allocation3 + $0x78] sm:$0xf0] %v415_v32 }
  0xe1   :  { %v237_v14 = vpop.permute.xlu1 %236 }
  0xe2   :  { %v235_v19 = vpop.permute.xlu0 %234 }
  0xe3   :  { %v240_v20 = vsel %vm238_vm11, %v235_v19, %v237_v14 }
  0xe4   :  { %v244_v22 = vsel %vm897_vm5, %v240_v20, 0.0 }
  0xe5   :  { %v432_v18 = vpop.permute.xlu1 %431  ;;  %246 = vst [vmem:[#allocation3 + $0x88] sm:$0xf] %v244_v22 }
  0xe6   :  { %v233_v25 = vpop.permute.xlu0 %232  ;;  %v458_v26 = vld [vmem:[#allocation3 + $0x70] sm:$0xff] }
  0xe7   :  { %v239_v27 = vsel %vm238_vm11, %v233_v25, %v235_v19  ;;  %v459_v29 = vld [vmem:[#allocation3 + $0x78] sm:$0xff]  ;;  %v712_v34 = vpack.c.bf16 %v458_v26, %v454_v33 }
  0xe8   :  { %v243_v30 = vsel %vm906_vm7, %v239_v27, 0.0  ;;  %v710_v31 = vpack.c.bf16 %v459_v29, %v455_v28 }
  0xe9   :  { %v430_v21 = vpop.permute.xlu1 %429  ;;  %245 = vst [vmem:[#allocation3 + $0x80] sm:$0xf] %v243_v30 }
  0xea   :  { %v435_v24 = vsel %vm238_vm11, %v430_v21, %v432_v18  ;;  %v434_v35 = vpop.permute.xlu0 %433  ;;  %711 = vmatprep.subr.bf16.mxu1 %v710_v31 }
  0xeb   :  { %v439_v23 = vsel %vm906_vm7, %v435_v24, 0.0  ;;  %v436_v36 = vsel %vm238_vm11, %v432_v18, %v434_v35  ;;  %713 = vmatpush1.bf16.msra.mxu1 %v712_v34 }
  0xec   :  { %441 = vst [vmem:[#allocation3 + $0x90] sm:$0xf] %v439_v23  ;;  %v440_v37 = vsel %vm897_vm5, %v436_v36, 0.0  ;;  %v461_v38 = vld [vmem:[#allocation3 + $0x88] sm:$0xf] }
  0xed   :  { %442 = vst [vmem:[#allocation3 + $0x98] sm:$0xf] %v440_v37  ;;  %692 = vmatprep.subr.msk.mxu0 %vm468_vm12, %v461_v38 }
  0xf0   :  { %v460_v51 = vld [vmem:[#allocation3 + $0x80] sm:$0xf] }
  0xf1   :  { %693 = vmatpush1.msk.msra.mxu0 %vm468_vm12, %v460_v51 }
  0xf2   :  { %694 = vmatmul.mubr.msk.f32.vlgmr.msra.gmra.mrb[0].mxu0 %vm464_vm13, %v443_v39 }
  0xf3   :  { %v462_v41 = vld [vmem:[#allocation3 + $0x90] sm:$0xf] }
  0xf4   :  { %v463_v40 = vld [vmem:[#allocation3 + $0x98] sm:$0xf] }
  0xf5   :  { %695 = vmatprep.subr.msk.mxu1 %vm468_vm12, %v463_v40 }
  0xf6   :  { %696 = vmatpush1.msk.msra.mxu1 %vm468_vm12, %v462_v41 }
  0xf7   :  { %697 = vmatmul.mubr.msk.f32.vlgmr.msra.gmra.mrb[0].mxu1 %vm464_vm13, %v443_v39 }
 0x1c5   :  { %v547_v43 = vpop.f32.mrb[0].mxu0 }
 0x1c6   :  { %v549_v44 = vpop.f32.mrb[1].mxu0 }
 0x1c7   :  { %v623_v45 = vadd.f32 %v549_v44, %v547_v43 }
 0x1ca   :  { %v618_v46 = vpop.f32.mrb[0].mxu1 }
 0x1cb   :  { %v624_v47 = vadd.f32 %v623_v45, %v618_v46  ;;  %v620_v42 = vpop.f32.mrb[1].mxu1 }
 0x1cd   :  { %v625_v48 = vadd.f32 %v624_v47, %v620_v42 }
 0x1cf   :  { %626 = vadd.xlane.f32.xlu0 %v625_v48 }
 0x25c   :  { %v627_v49 = vpop.xlane.xlu0 %626 }
 0x25d   :  { %v628_v50 = vmul.f32 0.001953125, %v627_v49 }
 0x25f   :  { %v629_v52 = vsub.f32 %v547_v43, %v628_v50  ;;  %v630_v53 = vsub.f32 %v549_v44, %v628_v50  ;;  %v631_v54 = vsub.f32 %v618_v46, %v628_v50  ;;  %v632_v55 = vsub.f32 %v620_v42, %v628_v50 }
 0x261   :  { %v633_v56 = vmul.f32 %v629_v52, %v629_v52  ;;  %v634_v57 = vmul.f32 %v630_v53, %v630_v53  ;;  %v635_v58 = vmul.f32 %v631_v54, %v631_v54  ;;  %v636_v60 = vmul.f32 %v632_v55, %v632_v55 }
 0x263   :  { %v637_v59 = vadd.f32 %v634_v57, %v633_v56 }
 0x265   :  { %v638_v61 = vadd.f32 %v637_v59, %v635_v58 }
 0x267   :  { %v639_v62 = vadd.f32 %v638_v61, %v636_v60 }
 0x269   :  { %640 = vadd.xlane.f32.xlu1 %v639_v62 }
 0x27a   :  { %659 = vperm.xlu1 %728, %v656_v0  }
 0x2f6   :  { %v641_v1 = vpop.xlane.xlu1 %640 }
 0x2f7   :  { %v642_v2 = vmul.f32 0.001953125, %v641_v1 }
 0x2f9   :  { %v644_v3 = vadd.f32 1e-05, %v642_v2 }
 0x2fa   :  { %v660_v8 = vpop.permute.xlu1 %659 }
 0x2fb   :  { %729 = vrsqrt.f32 %v644_v3 }
 0x305   :  { %v730_v5 = vpop.eup %729 }
 0x306   :  { %v646_v6 = vmul.f32 %v730_v5, %v643_v4 }
 0x308   :  { %649 = vperm.xlu0 %727, %v646_v6  }
 0x387   :  { %v650_v7 = vpop.permute.xlu0 %649 }
 0x388   :  { %v652_v9 = vmul.f32 %v650_v7, %v629_v52  ;;  %v653_v10 = vmul.f32 %v650_v7, %v630_v53  ;;  %v654_v11 = vmul.f32 %v650_v7, %v631_v54  ;;  %v655_v12 = vmul.f32 %v650_v7, %v632_v55 }
 0x38a   :  { %v662_v13 = vadd.f32 %v660_v8, %v652_v9  ;;  %v663_v14 = vadd.f32 %v660_v8, %v653_v10  ;;  %v664_v15 = vadd.f32 %v660_v8, %v654_v11  ;;  %v665_v16 = vadd.f32 %v660_v8, %v655_v12 }
 0x38c   :  { %v666_v17 = vmax.f32 %v662_v13, 0.0  ;;  %v667_v32 = vmax.f32 %v663_v14, 0.0  ;;  %v668_v18 = vmax.f32 %v664_v15, 0.0  ;;  %v669_v19 = vmax.f32 %v665_v16, 0.0 }
 0x38e   :  { %670 = vst [vmem:[#allocation7] sm:$0xff] %v666_v17  ;;  %671 = vst [vmem:[#allocation7 + $0x8] sm:$0xff] %v667_v32 }
 0x38f   :  { %673 = vst [vmem:[#allocation7 + $0x10] sm:$0xff] %v668_v18  ;;  %674 = vst [vmem:[#allocation7 + $0x18] sm:$0xff] %v669_v19 }
 0x390   :  { %764 = shalt.err (!%p761_p12)
}
 0x391   :  { %s765_s18 = scalar_lea.hbm %s996_s4, 512 }
 0x392   :  { %p766_p13 = scmp.ne.s32.totalorder %s996_s4, %s765_s18  ;;  %p769_p0 = scmp.lt.u32.totalorder %s765_s18, %s996_s4 }
 0x394   :  { %p771_p1 = pnand %p769_p0, %p766_p13 }
 0x396   :  { %774 = shalt.err (!%p771_p1)
}
 0x397   :  { %s791_s23 = smov 256  }
 0x398   :  { %686 = dma.vmem_to_hbm [thread:$0]  %s681_s3, 512, %s996_s4, [#allocation6], %s791_s23, %s791_s23, %s784_s6  }
 0x399   :  { %777 = dma.done.wait [#allocation6], 512  }
 0x39a   :  { %778 = vsyncadd [#allocation6], 4294966784 }
 0x39b   :  { %690 = vsyncpa [#allocation5], 1 }
 0x39c   :  { %691 = vsyncpa [#allocation6], 1 }

</bundles_post_ra>
